<compile_context>
chip_gen: v6e
topology: v6e:2x2x1
jax: 0.10.0
libtpu: 0.0.40
codegen_flags: <defaults>
</compile_context>

<pallas_src>
import functools

import jax
import jax.numpy as jnp
from jax import lax
from jax.experimental import pallas as pl
from jax.experimental.pallas import tpu as pltpu

_EPS = 1e-8


# ----------------------------------------------------------------------------
# Sizing helpers.
# ----------------------------------------------------------------------------
def _vmem_limit_bytes():
    """Scoped-VMEM limit: above the 16/32 MiB defaults, headroom under physical."""
    try:
        cap = pltpu.get_tpu_info().vmem_capacity_bytes
    except Exception:  # conservative fallback = v7x physical per-core cap
        cap = 64 * 1024 * 1024
    return int(cap * 3 // 4)


def _round_up(x, m):
    return ((x + m - 1) // m) * m


def _pick_chunk_n(N, K):
    """Rows per in-kernel chunk on the whole-block path (~2 MiB f32 working set)."""
    rows = (2 << 20) // max(1, K * 4)
    if rows >= N:
        return N
    return max(8, (int(rows) // 8) * 8)


def _pick_block_k(N, K_pad, itemsize, vmem_budget):
    """Largest multiple-of-128 divisor of K_pad with ~<=4 MiB input blocks and a
    ~6-buffer (2x in, 2x out, f32 temps) resident footprint under the budget."""
    q = K_pad // 128
    per128_in = N * 128 * itemsize
    per128_res = N * 128 * (4 * itemsize + 8)
    max_d = max(1, min((4 << 20) // max(per128_in, 1),
                       vmem_budget // max(per128_res, 1)))
    best = 1
    d = 1
    while d * d <= q:
        if q % d == 0:
            for cand in (d, q // d):
                if cand <= max_d and cand > best:
                    best = cand
        d += 1
    return best * 128


# ----------------------------------------------------------------------------
# Path 1: whole (N, K) block per batch element, chunked over N in-kernel.
# ----------------------------------------------------------------------------
def _gln_whole_kernel(y_ref, gamma_ref, beta_ref, o_ref, *, chunk_n, inv_count):
    # y_ref: (N, K); gamma_ref / beta_ref: (N, 1)  (batch dim is pl.Squeezed()).
    N, _ = y_ref.shape
    chunk_n = min(chunk_n, N)
    n_full = N // chunk_n
    rem = N - n_full * chunk_n
    tail0 = n_full * chunk_n

    def load_f32(n0, rows):
        return y_ref[pl.ds(n0, rows), :].astype(jnp.float32)

    # ---- pass 1: global mean (f32 accumulation over VMEM-resident data) ----
    def sum_of(n0, rows):
        return jnp.sum(load_f32(n0, rows))

    if n_full > 1:
        s = lax.fori_loop(
            0, n_full,
            lambda c, a: a + sum_of(pl.multiple_of(c * chunk_n, chunk_n), chunk_n),
            jnp.zeros((), jnp.float32))
    else:
        s = sum_of(0, chunk_n)
    if rem:
        s = s + sum_of(tail0, rem)
    mean = s * inv_count

    # ---- pass 2: centered sum of squares (two-pass, matches the reference) ----
    def sq_of(n0, rows):
        d = load_f32(n0, rows) - mean
        return jnp.sum(d * d)

    if n_full > 1:
        sq = lax.fori_loop(
            0, n_full,
            lambda c, a: a + sq_of(pl.multiple_of(c * chunk_n, chunk_n), chunk_n),
            jnp.zeros((), jnp.float32))
    else:
        sq = sq_of(0, chunk_n)
    if rem:
        sq = sq + sq_of(tail0, rem)
    inv_std = lax.rsqrt(sq * inv_count + _EPS)

    # ---- pass 3: folded per-channel affine (1 mul + 1 add per element) ----
    def write(n0, rows):
        g = gamma_ref[pl.ds(n0, rows), :].astype(jnp.float32)
        b = beta_ref[pl.ds(n0, rows), :].astype(jnp.float32)
        scale = g * inv_std
        shift = b - mean * scale
        o_ref[pl.ds(n0, rows), :] = (
            load_f32(n0, rows) * scale + shift).astype(o_ref.dtype)

    if n_full > 1:
        def body(c, carry):
            write(pl.multiple_of(c * chunk_n, chunk_n), chunk_n)
            return carry
        lax.fori_loop(0, n_full, body, jnp.zeros((), jnp.int32))
    else:
        write(0, chunk_n)
    if rem:
        write(tail0, rem)


def _gln_whole(y, gamma, beta, chunk_n):
    M, N, K = y.shape
    kernel = functools.partial(_gln_whole_kernel, chunk_n=chunk_n,
                               inv_count=1.0 / float(N * K))
    return pl.pallas_call(
        kernel,
        out_shape=jax.ShapeDtypeStruct((M, N, K), y.dtype),
        grid_spec=pltpu.PrefetchScalarGridSpec(
            num_scalar_prefetch=0,
            grid=(M,),
            in_specs=[
                pl.BlockSpec((pl.Squeezed(), N, K), lambda m: (m, 0, 0)),
                pl.BlockSpec((pl.Squeezed(), N, 1), lambda m: (0, 0, 0)),
                pl.BlockSpec((pl.Squeezed(), N, 1), lambda m: (0, 0, 0)),
            ],
            out_specs=pl.BlockSpec((pl.Squeezed(), N, K), lambda m: (m, 0, 0)),
        ),
        compiler_params=pltpu.CompilerParams(
            dimension_semantics=("parallel",),
            vmem_limit_bytes=_vmem_limit_bytes(),
        ),
    )(y, gamma, beta)


# ----------------------------------------------------------------------------
# Path 2: K-tiled two-pass (bounded VMEM, lane-aligned tiles, pivoted stats).
# ----------------------------------------------------------------------------
def _gln_tiled_kernel(y_ref, gamma_ref, beta_ref, o_ref,
                      sum_ref, sq_ref, pivot_ref, scale_ref, shift_ref,
                      *, inv_count, n_pad):
    p = pl.program_id(1)   # 0 = accumulate stats, 1 = normalize + store
    k = pl.program_id(2)

    @pl.when(jnp.logical_and(p == 0, k == 0))
    def _init():
        # Pivot (first-tile mean) shifts the single-pass accumulation so that
        # E[(y-pivot)^2] - E[y-pivot]^2 does not catastrophically cancel when
        # |mean| >> std.
        y0 = y_ref[...].astype(jnp.float32)
        pivot_ref[...] = jnp.mean(y0, keepdims=True)
        sum_ref[...] = jnp.zeros_like(sum_ref)
        sq_ref[...] = jnp.zeros_like(sq_ref)

    @pl.when(p == 0)
    def _accumulate():
        z = y_ref[...].astype(jnp.float32) - pivot_ref[...]   # (N, TK)
        sum_ref[...] += jnp.sum(z, keepdims=True)              # f32 accumulation
        sq_ref[...] += jnp.sum(z * z, keepdims=True)

    @pl.when(jnp.logical_and(p == 1, k == 0))
    def _finalize_stats():
        pivot = pivot_ref[...]
        # Zero padding (K rounded up to the tile size) contributed (0 - pivot)
        # per padded element to the shifted sums; remove it exactly.
        s = sum_ref[...] + pivot * n_pad
        sq = sq_ref[...] - pivot * pivot * n_pad
        mean_z = s * inv_count
        mean = pivot + mean_z
        var = jnp.maximum(sq * inv_count - mean_z * mean_z, 0.0)
        inv_std = lax.rsqrt(var + _EPS)
        gamma = gamma_ref[...].astype(jnp.float32)             # (N, 1)
        beta = beta_ref[...].astype(jnp.float32)               # (N, 1)
        scale_ref[...] = gamma * inv_std                       # hoisted once/batch
        shift_ref[...] = beta - mean * (gamma * inv_std)

    @pl.when(p == 1)
    def _normalize():
        y = y_ref[...].astype(jnp.float32)                     # (N, TK)
        o_ref[...] = (y * scale_ref[...] + shift_ref[...]).astype(o_ref.dtype)


def _y_tiled_spec(N, block_k):
    shape = (pl.Squeezed(), N, block_k)
    idx = lambda m, p, k: (m, 0, k)
    if block_k <= 256:
        # Tiny tiles expose DMA latency behind the default 2-deep pipeline.
        try:
            return pl.BlockSpec(shape, idx, pipeline_mode=pl.Buffered(3))
        except TypeError:  # pipeline_mode unavailable in this JAX version
            pass
    return pl.BlockSpec(shape, idx)


def _gln_tiled(y, gamma, beta, block_k, *, n_valid):
    M, N, K_pad = y.shape
    assert K_pad % block_k == 0 and block_k % 128 == 0
    kt = K_pad // block_k
    n_pad = N * K_pad - n_valid
    kernel = functools.partial(_gln_tiled_kernel,
                               inv_count=1.0 / float(n_valid),
                               n_pad=float(n_pad))
    return pl.pallas_call(
        kernel,
        out_shape=jax.ShapeDtypeStruct((M, N, K_pad), y.dtype),
        grid_spec=pltpu.PrefetchScalarGridSpec(
            num_scalar_prefetch=0,
            grid=(M, 2, kt),
            in_specs=[
                _y_tiled_spec(N, block_k),
                pl.BlockSpec((pl.Squeezed(), N, 1), lambda m, p, k: (0, 0, 0)),
                pl.BlockSpec((pl.Squeezed(), N, 1), lambda m, p, k: (0, 0, 0)),
            ],
            # Park the output window on block (m, 0, 0) during the stats pass
            # (p == 0).  It is never written there, and the block index does not
            # change until (p == 1, k == 0) — which maps to the SAME block — so
            # the uninitialized buffer is never flushed to HBM (Pallas only
            # writes back on an output block-index change).  Do not reorder the
            # grid axes without revisiting this.
            out_specs=pl.BlockSpec((pl.Squeezed(), N, block_k),
                                   lambda m, p, k: (m, 0, k * p)),
            scratch_shapes=[
                pltpu.VMEM((1, 1), jnp.float32),   # shifted running sum
                pltpu.VMEM((1, 1), jnp.float32),   # shifted running sum of squares
                pltpu.VMEM((1, 1), jnp.float32),   # pivot (first-tile mean)
                pltpu.VMEM((N, 1), jnp.float32),   # folded scale = gamma * inv_std
                pltpu.VMEM((N, 1), jnp.float32),   # folded shift = beta - mean*scale
            ],
        ),
        compiler_params=pltpu.CompilerParams(
            dimension_semantics=("parallel", "arbitrary", "arbitrary"),
            vmem_limit_bytes=_vmem_limit_bytes(),
        ),
    )(y, gamma, beta)


# ----------------------------------------------------------------------------
# Wrapper: pick a path based on a resident-VMEM estimate.
# ----------------------------------------------------------------------------
def global_layer_norm(y, gamma, beta, *, block_k=None, chunk_n=None,
                      force_tiled=False):
    """gLN forward.  y: [M, N, K]; gamma, beta: [1, N, 1]."""
    M, N, K = y.shape
    assert gamma.shape == (1, N, 1) and beta.shape == (1, N, 1)
    itemsize = jnp.dtype(y.dtype).itemsize
    budget = _vmem_limit_bytes()

    if chunk_n is None:
        chunk_n = _pick_chunk_n(N, K)
    # Whole-block footprint: double-buffered in/out blocks; in-kernel f32
    # temporaries are bounded to ~chunk_n*K*4 each by the chunked kernel
    # (the old 2*N*K*4 term is gone), so more shapes stay on the 1-read path.
    whole_bytes = 4 * N * K * itemsize + 3 * min(chunk_n, N) * K * 4

    if not force_tiled and whole_bytes <= budget:
        return _gln_whole(y, gamma, beta, chunk_n)

    # --- bounded-VMEM tiled path (always available; K padded to the tile) ---
    if block_k is None:
        K_pad = _round_up(K, 128)
        block_k = _pick_block_k(N, K_pad, itemsize, budget)   # divides K_pad
    else:
        assert block_k % 128 == 0, "block_k must be a multiple of 128"
        K_pad = _round_up(K, block_k)
    y_t = y if K_pad == K else jnp.pad(y, ((0, 0), (0, 0), (0, K_pad - K)))
    out = _gln_tiled(y_t, gamma, beta, block_k, n_valid=N * K)
    return out if K_pad == K else out[:, :, :K]


def reference_gln(y, gamma, beta):
    # Pure-JAX reference matching the PyTorch forward exactly.
    mean = y.mean(axis=1, keepdims=True).mean(axis=2, keepdims=True)
    var = ((y - mean) ** 2).mean(axis=1, keepdims=True).mean(axis=2, keepdims=True)
    return gamma * (y - mean) / jnp.power(var + _EPS, 0.5) + beta


if __name__ == "__main__":
    # 1) Module-like small shape: batch=2, channel_size=4, length=16 (whole path).
    M, N, K = 2, 4, 16
    y = jax.random.normal(jax.random.PRNGKey(0), (M, N, K), dtype=jnp.float32)
    gamma = jnp.ones((1, N, 1), jnp.float32)    # reset_parameters(): gamma = 1
    beta = jnp.zeros((1, N, 1), jnp.float32)    # reset_parameters(): beta = 0
    out = jax.block_until_ready(global_layer_norm(y, gamma, beta))
    assert out.shape == (M, N, K)
    assert jnp.allclose(out, reference_gln(y, gamma, beta), atol=1e-5, rtol=1e-5), \
        "whole-block (static) mismatch"

    # 2) Whole path with the chunked fori_loop body (chunk_n < N).
    M2, N2, K2 = 2, 16, 512
    y2 = jax.random.normal(jax.random.PRNGKey(1), (M2, N2, K2),
                           dtype=jnp.float32) * 3.0 + 1.5
    g2 = jnp.full((1, N2, 1), 1.25, jnp.float32)
    b2 = jnp.full((1, N2, 1), -0.5, jnp.float32)
    out2 = jax.block_until_ready(global_layer_norm(y2, g2, b2, chunk_n=8))
    assert jnp.allclose(out2, reference_gln(y2, g2, b2), atol=1e-5, rtol=1e-5), \
        "whole-block (chunked) mismatch"

    # 3) Tiled two-pass path (forced), multiple K tiles, large mean offset to
    #    exercise the pivoted (cancellation-safe) statistics.
    M3, N3, K3 = 2, 8, 1024
    y3 = jax.random.normal(jax.random.PRNGKey(2), (M3, N3, K3),
                           dtype=jnp.float32) * 2.0 + 10.0
    g3 = jnp.full((1, N3, 1), 1.5, jnp.float32)
    b3 = jnp.full((1, N3, 1), 0.25, jnp.float32)
    out3 = jax.block_until_ready(
        global_layer_norm(y3, g3, b3, force_tiled=True, block_k=512))
    assert jnp.allclose(out3, reference_gln(y3, g3, b3), atol=1e-4, rtol=1e-5), \
        "tiled mismatch"

    # 4) Tiled path with K not a multiple of 128 (zero-padded + exact correction).
    M4, N4, K4 = 2, 8, 300
    y4 = jax.random.normal(jax.random.PRNGKey(3), (M4, N4, K4),
                           dtype=jnp.float32) + 0.75
    g4 = jnp.full((1, N4, 1), 0.8, jnp.float32)
    b4 = jnp.full((1, N4, 1), 0.1, jnp.float32)
    out4 = jax.block_until_ready(global_layer_norm(y4, g4, b4, force_tiled=True))
    assert out4.shape == (M4, N4, K4)
    assert jnp.allclose(out4, reference_gln(y4, g4, b4), atol=1e-5, rtol=1e-5), \
        "tiled padded-K mismatch"

    print("KERNEL_OK")
</pallas_src>

<mosaic_0001>
module attributes {stable_mosaic.version = 11 : i64} {
  func.func @_gln_whole_kernel(%arg0: i32, %arg1: memref<1x4x16xf32, #tpu.memory_space<vmem>>, %arg2: memref<1x4x1xf32, #tpu.memory_space<vmem>>, %arg3: memref<1x4x1xf32, #tpu.memory_space<vmem>>, %arg4: memref<1x4x16xf32, #tpu.memory_space<vmem>>) attributes {dimension_semantics = [#tpu.dimension_semantics<parallel>], iteration_bounds = array<i64: 2>, scalar_prefetch = 0 : i64, scratch_operands = 0 : i64, tpu.core_type = #tpu.core_type<tc>, window_params = [{transform_indices = @transform_0, window_bounds = array<i64: 1, 4, 16>}, {pipeline_mode = #tpu.pipeline_mode<synchronous>, transform_indices = @transform_1, window_bounds = array<i64: 1, 4, 1>}, {pipeline_mode = #tpu.pipeline_mode<synchronous>, transform_indices = @transform_2, window_bounds = array<i64: 1, 4, 1>}, {transform_indices = @transform_3, window_bounds = array<i64: 1, 4, 16>}]} {
    %c0 = arith.constant 0 : index
    %c0_0 = arith.constant 0 : index
    %c0_1 = arith.constant 0 : index
    %0 = vector.load %arg1[%c0, %c0_0, %c0_1] : memref<1x4x16xf32, #tpu.memory_space<vmem>>, vector<1x4x16xf32>
    %1 = vector.shape_cast %0 : vector<1x4x16xf32> to vector<4x16xf32>
    %2 = vector.shape_cast %1 : vector<4x16xf32> to vector<1x4x16xf32>
    %cst = arith.constant dense<0.000000e+00> : vector<1xf32>
    %3 = vector.multi_reduction <add>, %2, %cst [1, 2] : vector<1x4x16xf32> to vector<1xf32>
    %4 = vector.shape_cast %3 : vector<1xf32> to vector<1x1x1xf32>
    %5 = vector.extract %4[0, 0, 0] : f32 from vector<1x1x1xf32>
    %cst_2 = arith.constant 1.562500e-02 : f32
    %6 = arith.mulf %5, %cst_2 : f32
    %c0_3 = arith.constant 0 : index
    %c0_4 = arith.constant 0 : index
    %c0_5 = arith.constant 0 : index
    %7 = vector.load %arg1[%c0_3, %c0_4, %c0_5] : memref<1x4x16xf32, #tpu.memory_space<vmem>>, vector<1x4x16xf32>
    %8 = vector.shape_cast %7 : vector<1x4x16xf32> to vector<4x16xf32>
    %9 = vector.broadcast %6 : f32 to vector<4x16xf32>
    %10 = arith.subf %8, %9 : vector<4x16xf32>
    %11 = arith.mulf %10, %10 : vector<4x16xf32>
    %12 = vector.shape_cast %11 : vector<4x16xf32> to vector<1x4x16xf32>
    %cst_6 = arith.constant dense<0.000000e+00> : vector<1xf32>
    %13 = vector.multi_reduction <add>, %12, %cst_6 [1, 2] : vector<1x4x16xf32> to vector<1xf32>
    %14 = vector.shape_cast %13 : vector<1xf32> to vector<1x1x1xf32>
    %15 = vector.extract %14[0, 0, 0] : f32 from vector<1x1x1xf32>
    %cst_7 = arith.constant 1.562500e-02 : f32
    %16 = arith.mulf %15, %cst_7 : f32
    %cst_8 = arith.constant 9.99999993E-9 : f32
    %17 = arith.addf %16, %cst_8 : f32
    %18 = math.rsqrt %17 : f32
    %c0_9 = arith.constant 0 : index
    %c0_10 = arith.constant 0 : index
    %c0_11 = arith.constant 0 : index
    %19 = vector.load %arg2[%c0_9, %c0_10, %c0_11] : memref<1x4x1xf32, #tpu.memory_space<vmem>>, vector<1x4x1xf32>
    %20 = vector.shape_cast %19 : vector<1x4x1xf32> to vector<4x1xf32>
    %c0_12 = arith.constant 0 : index
    %c0_13 = arith.constant 0 : index
    %c0_14 = arith.constant 0 : index
    %21 = vector.load %arg3[%c0_12, %c0_13, %c0_14] : memref<1x4x1xf32, #tpu.memory_space<vmem>>, vector<1x4x1xf32>
    %22 = vector.shape_cast %21 : vector<1x4x1xf32> to vector<4x1xf32>
    %23 = vector.broadcast %18 : f32 to vector<4x1xf32>
    %24 = arith.mulf %20, %23 : vector<4x1xf32>
    %25 = vector.broadcast %6 : f32 to vector<4x1xf32>
    %26 = arith.mulf %25, %24 : vector<4x1xf32>
    %27 = arith.subf %22, %26 : vector<4x1xf32>
    %c0_15 = arith.constant 0 : index
    %c0_16 = arith.constant 0 : index
    %c0_17 = arith.constant 0 : index
    %28 = vector.load %arg1[%c0_15, %c0_16, %c0_17] : memref<1x4x16xf32, #tpu.memory_space<vmem>>, vector<1x4x16xf32>
    %29 = vector.shape_cast %28 : vector<1x4x16xf32> to vector<4x16xf32>
    %30 = vector.broadcast %24 : vector<4x1xf32> to vector<4x16xf32>
    %31 = arith.mulf %29, %30 : vector<4x16xf32>
    %32 = vector.broadcast %27 : vector<4x1xf32> to vector<4x16xf32>
    %33 = arith.addf %31, %32 : vector<4x16xf32>
    %c0_18 = arith.constant 0 : index
    %c0_19 = arith.constant 0 : index
    %c0_20 = arith.constant 0 : index
    %34 = vector.load %arg4[%c0_18, %c0_19, %c0_20] : memref<1x4x16xf32, #tpu.memory_space<vmem>>, vector<1x4x16xf32>
    %35 = vector.shape_cast %34 : vector<1x4x16xf32> to vector<4x16xf32>
    %36 = vector.shape_cast %33 : vector<4x16xf32> to vector<1x4x16xf32>
    tpu.vector_store %arg4[%c0_18, %c0_19, %c0_20], %36 {strides = array<i32>} : memref<1x4x16xf32, #tpu.memory_space<vmem>>, vector<1x4x16xf32>,
    return
  }
  func.func @transform_0(%arg0: i32) -> (i32, i32, i32) {
    %c0_i32 = arith.constant 0 : i32
    %c0_i32_0 = arith.constant 0 : i32
    %c0_i32_1 = arith.constant 0 : i32
    return %arg0, %c0_i32, %c0_i32_0 : i32, i32, i32
  }
  func.func @transform_1(%arg0: i32) -> (i32, i32, i32) {
    %c0_i32 = arith.constant 0 : i32
    %c0_i32_0 = arith.constant 0 : i32
    %c0_i32_1 = arith.constant 0 : i32
    %c0_i32_2 = arith.constant 0 : i32
    return %c0_i32, %c0_i32_0, %c0_i32_1 : i32, i32, i32
  }
  func.func @transform_2(%arg0: i32) -> (i32, i32, i32) {
    %c0_i32 = arith.constant 0 : i32
    %c0_i32_0 = arith.constant 0 : i32
    %c0_i32_1 = arith.constant 0 : i32
    %c0_i32_2 = arith.constant 0 : i32
    return %c0_i32, %c0_i32_0, %c0_i32_1 : i32, i32, i32
  }
  func.func @transform_3(%arg0: i32) -> (i32, i32, i32) {
    %c0_i32 = arith.constant 0 : i32
    %c0_i32_0 = arith.constant 0 : i32
    %c0_i32_1 = arith.constant 0 : i32
    return %arg0, %c0_i32, %c0_i32_0 : i32, i32, i32
  }
}

</mosaic_0001>

<bundles_post_ra>
// kernel: tpu_custom_call.1
= control target key start
LH: loop header
LB: loop body
LE: loop exit
PB: predicated region body
PF: predicated region fallthrough
CT: control target
= control target key end

     0   :  { %8 = vsyncpa [#allocation3], 0  ;;  %s529_s0 = inlined_call_operand.vmem [shape: f32[2,4,16], index: 0, kind: input, shape index: {}]   ;;  %s530_s1 = inlined_call_operand.vmem [shape: f32[1,4,1], index: 1, kind: input, shape index: {}]   ;;  %s531_s2 = inlined_call_operand.vmem [shape: f32[1,4,1], index: 2, kind: input, shape index: {}]   ;;  %s532_s3 = inlined_call_operand.hbm [shape: f32[2,4,16], index: 3, kind: output, shape index: {}]  }
   0x1   :  { %10 = vsyncpa [#allocation3 + $0x1], 0  ;;  %s433_s12 = smov 0   ;;  %s435_s13 = smov 0  }
   0x2   :  { %s437_s14 = smov 0   ;;  %s439_s15 = smov 0  }
   0x3 LB: > { %s454_s16 = sadd.s32 4294967295, %s409_s15   ;;  %s289_s17 = sadd.s32 4294967294, %s409_s15   ;;  %s409_s15 = sphi %s439_s15, %s538_s15   ;;  %s405_s14 = sphi %s437_s14, %s537_s14   ;;  %s401_s13 = sphi %s435_s13, %s536_s13   ;;  %s397_s12 = sphi %s433_s12, %s535_s12  }
   0x4   : > { %s458_s18 = sadd.s32 1, %s409_s15   ;;  %s91_s19 = sadd.s32 1, %s405_s14 }
   0x5   : > { %s88_s20 = ssub.s32 %s409_s15, %s458_s18  ;;  %p101_p0 = scmp.ne.s32.totalorder %s405_s14, %s401_s13 }
   0x6   : > { %p89_p1 = scmp.eq.s32.totalorder %s88_s20, 0  ;;  %p102_p2 = scmp.eq.s32.totalorder %s454_s16, 1 }
   0x7   : > { %p107_p3 = scmp.ne.s32.totalorder %s401_s13, %s397_s12  ;;  %p108_p4 = scmp.eq.s32.totalorder %s289_s17, 1 }
   0x8   : > { %s469_s21 = scalar_select %p89_p1, %s405_s14, %s91_s19  }
   0x9   : > { %p471_p5 = por %p102_p2, %p101_p0  ;;  %p475_p6 = por %p108_p4, %p107_p3 }
   0xa   : > { %p292_p7 = scmp.ge.s32.totalorder %s409_s15, 1  ;;  %p139_p8 = scmp.lt.s32.totalorder %s409_s15, 3 }
   0xc   : > { %p140_p9 = pnand %p292_p7, %p139_p8 }
   0xd   : > { %p162_p10 = scmp.lt.s32.totalorder (!%p140_p9), %s454_s16, 1  ;;  %s159_s17 = sand.u32 (!%p140_p9), 1, %s401_s13  }
   0xe   : > { %143 = sbr.rel (%p140_p9) target bundleno = 648 (0x288), region = 32  ;;  %s293_s19 = sshll.u32 (!%p140_p9), %s159_s17, 2 }
   0xf   : > { %s296_s20 = sshll.u32 (!%p140_p9), %s454_s16, 6 }
  0x13   : > { %s163_s24 = scalar_select %p162_p10, %s454_s16, 1  ;;  %vm167_vm0 = vcmask 125952   ;;  %v411_v17 = vmov 0   ;;  %v197_v23 = vld [vmem:[%s530_s1] sm:$0xf] }
  0x14   : > { %345 = vset.pattern.permute.xlu1 %v411_v17  ;;  %346 = vset.pattern.permute.xlu0 %v411_v17  ;;  %v198_v26 = vld [vmem:[%s531_s2] sm:$0xf] }
  0x15   : > { %s294_s25 = sshll.u32 %s163_s24, 2  ;;  %s161_s24 = scalar_lea.vmem [#allocation2], %s293_s19 }
  0x16   : > { %s165_s28 = scalar_lea.vmem %s529_s0, %s294_s25  ;;  %s230_s25 = sshll.u32 %s161_s24, 4  ;;  %s231_s25 = int_to_ptr.vmem [resolvable:$true] %s230_s25 }
  0x17   : > { %v166_v0 = vld [vmem:[%s165_s28] sm:$0xf]  ;;  %s228_s28 = scalar_lea.hbm %s532_s3, %s296_s20 }
  0x18   : > { %v168_v1 = vsel %vm167_vm0, %v166_v0, 0.0 }
  0x19   : > { %169 = vadd.xlane.f32.xlu0 %v168_v1 }
  0xa2   : > { %v170_v2 = vpop.xlane.xlu0 %169 }
  0xa3   : > { %v171_v3 = vrot.slane %v170_v2, 4 }
  0xa5   : > { %v172_v4 = vadd.f32 %v171_v3, %v170_v2 }
  0xa7   : > { %v173_v5 = vrot.slane %v172_v4, 2 }
  0xa9   : > { %v174_v6 = vadd.f32 %v173_v5, %v172_v4 }
  0xab   : > { %v175_v7 = vrot.slane %v174_v6, 1 }
  0xad   : > { %v176_v8 = vadd.f32 %v175_v7, %v174_v6 }
  0xaf   : > { %299 = vpush %v176_v8 }
  0xe0   : > { %s300_s29 = spop %299 }
  0xe1   : > { %s178_s30 = smul.f32 0.015625, %s300_s29  ;;  %s217_s29 = scalar_lea.sflag [#allocation3], %s159_s17 }
  0xe3   : > { %v179_v9 = vstv %s178_s30  ;;  %s349_s30 = scalar_lea.vmem %s231_s25, 64 }
  0xe4   : > { %v180_v10 = vsub.f32 %v166_v0, %v179_v9  ;;  %p350_p11 = scmp.ne.s32.totalorder %s231_s25, %s349_s30 }
  0xe6   : > { %v181_v11 = vmul.f32 %v180_v10, %v180_v10  ;;  %p351_p12 = pnand %p350_p11, %p471_p5 }
  0xe8   : > { %v182_v12 = vsel %vm167_vm0, %v181_v11, 0.0  ;;  %p352_p13 = pneg %p351_p12 }
  0xe9   : > { %183 = vadd.xlane.f32.xlu0 %v182_v12 }
 0x172   : > { %v184_v13 = vpop.xlane.xlu0 %183 }
 0x173   : > { %v185_v14 = vrot.slane %v184_v13, 4 }
 0x175   : > { %v186_v15 = vadd.f32 %v185_v14, %v184_v13 }
 0x177   : > { %v187_v16 = vrot.slane %v186_v15, 2 }
 0x179   : > { %v188_v18 = vadd.f32 %v187_v16, %v186_v15 }
 0x17b   : > { %v189_v19 = vrot.slane %v188_v18, 1 }
 0x17d   : > { %v190_v20 = vadd.f32 %v189_v19, %v188_v18 }
 0x17f   : > { %301 = vpush %v190_v20 }
 0x1b0   : > { %s302_s4 = spop %301 }
 0x1b1   : > { %s192_s5 = smul.f32 0.015625, %s302_s4  ;;  %s412_s4 = smov [#allocation2]  }
 0x1b2   : > { %s353_s16 = sshll.u32 %s412_s4, 4  ;;  %s354_s16 = int_to_ptr.vmem [resolvable:$false] %s353_s16 }
 0x1b3   : > { %s193_s6 = sadd.f32 1e-08, %s192_s5  ;;  %s355_s5 = scalar_lea.vmem %s354_s16, 128 }
 0x1b4   : > { %p356_p0 = scmp.lt.s32.totalorder %s231_s25, %s354_s16  ;;  %p357_p1 = scmp.lt.s32.totalorder %s355_s5, %s349_s30 }
 0x1b5   : > { %v194_v21 = vstv %s193_s6 }
 0x1b6   : > { %347 = vrsqrt.f32 %v194_v21  ;;  %p358_p2 = por %p357_p1, %p356_p0 }
 0x1b8   : > { %p359_p3 = pnand %p358_p2, %p352_p13 }
 0x1c3   : > { %v348_v22 = vpop.eup %347 }
 0x1c4   : > { %303 = vpush %v348_v22 }
 0x1f5   : > { %s304_s9 = spop %303 }
 0x1f6   : > { %v199_v24 = vstv %s304_s9 }
 0x1f7   : > { %v200_v25 = vmul.f32 %v199_v24, %v197_v23 }
 0x1f9   : > { %v201_v27 = vmul.f32 %v200_v25, %v179_v9  ;;  %205 = vperm.xlu1 %345, %v200_v25  }
 0x1fb   : > { %v202_v28 = vsub.f32 %v198_v26, %v201_v27 }
 0x1fd   : > { %211 = vperm.xlu1 %345, %v202_v28  }
 0x274   : > { %v206_v29 = vpop.permute.xlu1 %205 }
 0x275   : > { %v208_v30 = vmul.f32 %v206_v29, %v166_v0 }
 0x278   : > { %v212_v31 = vpop.permute.xlu1 %211 }
 0x279   : > { %v214_v32 = vadd.f32 %v212_v31, %v208_v30 }
 0x27b   : > { %215 = vst.msk [vmem:[%s161_s24] sm:$0xf] %vm167_vm0, %v214_v32 }
 0x27c   : > { %362 = shalt.err (!%p359_p3)
}
 0x27d   : > { %s363_s6 = scalar_lea.hbm %s228_s28, 64  ;;  %s367_s9 = scalar_lea.hbm %s532_s3, 128 }
 0x27e   : > { %p364_p4 = scmp.ne.s32.totalorder %s228_s28, %s363_s6  ;;  %p368_p9 = scmp.lt.s32.totalorder %s228_s28, %s532_s3 }
 0x27f   : > { %p369_p10 = scmp.lt.s32.totalorder %s367_s9, %s363_s6 }
 0x280   : > { %p365_p7 = pnand %p364_p4, %p471_p5 }
 0x281   : > { %p370_p11 = por %p369_p10, %p368_p9 }
 0x282   : > { %p366_p8 = pneg %p365_p7 }
 0x284   : > { %p371_p12 = pnand %p370_p11, %p366_p8 }
 0x286   : > { %374 = shalt.err (!%p371_p12)
}
 0x287   : > { %305 = dma.vmem_to_hbm [thread:$0]  (%p471_p5), %s231_s25, 64, %s228_s28, %s217_s29  }
 0x288 PF: > { %p311_p13 = scmp.ge.s32.totalorder %s409_s15, 2  ;;  %s242_s17 = sand.u32 1, %s397_s12  }
 0x289   : > { %s243_s19 = scalar_lea.sflag [#allocation3], %s242_s17 }
 0x28a   : > { %p308_p0 = pnand %p311_p13, %p475_p6 }
 0x28c   : > { %p309_p1 = pneg %p308_p0 }
 0x28e   : > { %392 = dma.done.wait (%p309_p1), %s243_s19, 64  }
 0x28f   : > { %394 = vsyncadd (%p309_p1), %s243_s19, 4294967232  ;;  %p13_p2 = scmp.ge.s32.totalorder %s458_s18, 4   ;;  %s535_s12 = smov %s401_s13 }
 0x290   : > { %s536_s13 = smov %s405_s14  ;;  %s537_s14 = smov %s469_s21 }
 0x291   : > { %s538_s15 = smov %s458_s18  ;;  %15 = sbr.rel (!%p13_p2) target bundleno = 3 (0x3), region = 67 }
 0x296   :  { %248 = vsyncpa [#allocation3], 1 }
 0x297   :  { %250 = vsyncpa [#allocation3 + $0x1], 1 }

</bundles_post_ra>
